<compile_context>
chip_gen: v7x
topology: tpu7x:2x2x1
jax: 0.10.0
libtpu: 0.0.40
codegen_flags: <defaults>
</compile_context>

<pallas_src>
import jax
import jax.numpy as jnp
from jax.experimental import pallas as pl
from jax.experimental.pallas import tpu as pltpu

EPS = 1e-5
EXPANSION = 4
LANE = 128
ROW_TILE = 512                      # review: 512 row tiles for the HBM-bound 1x1 matmuls
VMEM_LIMIT = 48 * 1024 * 1024       # explicit scoped-VMEM limit (fits v7x 64 MiB w/ headroom)


def _round_up(n, m):
    return (n + m - 1) // m * m


def _pad_to(a, shape):
    pads = [(0, t - s) for s, t in zip(a.shape, shape)]
    if all(p == (0, 0) for p in pads):
        return a
    return jnp.pad(a, pads)


# ----------------------------- kernel A: conv1 (1x1) -----------------------------

def _conv1_kernel(x_ref, s1_ref, b1_ref, w_ref, s2_ref, b2_ref, o_ref):
    # o = relu( (bf16(relu(x*s1 + b1)) @ W_bf16) * s2 + b2 ), stored bf16
    a = jnp.maximum(x_ref[...] * s1_ref[...] + b1_ref[...], 0.0).astype(jnp.bfloat16)
    h = jnp.dot(a, w_ref[...], preferred_element_type=jnp.float32)
    o_ref[...] = jnp.maximum(h * s2_ref[...] + b2_ref[...], 0.0).astype(o_ref.dtype)


def conv1_bn_relu(x2d, s1, b1, w1, s2, b2, tm=ROW_TILE):
    """a2 = relu(bn2( relu(bn1(x)) @ W1 )) row-tiled; bf16 MXU operands; bf16 output."""
    M, K = x2d.shape
    N = w1.shape[1]
    tm = min(tm, _round_up(M, 16))
    return pl.pallas_call(
        _conv1_kernel,
        out_shape=jax.ShapeDtypeStruct((M, N), jnp.bfloat16),
        grid=(pl.cdiv(M, tm),),
        in_specs=[
            pl.BlockSpec((tm, K), lambda i: (i, 0)),
            pl.BlockSpec((1, K), lambda i: (0, 0)),
            pl.BlockSpec((1, K), lambda i: (0, 0)),
            pl.BlockSpec((K, N), lambda i: (0, 0)),
            pl.BlockSpec((1, N), lambda i: (0, 0)),
            pl.BlockSpec((1, N), lambda i: (0, 0)),
        ],
        out_specs=pl.BlockSpec((tm, N), lambda i: (i, 0)),
        compiler_params=pltpu.CompilerParams(
            dimension_semantics=("parallel",), vmem_limit_bytes=VMEM_LIMIT),
    )(x2d, s1.reshape(1, K), b1.reshape(1, K), w1,
      s2.reshape(1, N), b2.reshape(1, N))


# ------------------ kernel B: conv2(3x3,strided)+bn3+relu+conv3+shortcut ------------------

def _make_tail_kernel(stride, TH, Wo, Pp, CinP, has_proj):
    s = stride

    def tap(a_ref, r, ky, kx):
        # (TH, Wo, Pp) window of tap (ky, kx) for output-row tile r; conv stride folded in.
        if s == 1:
            return a_ref[0, pl.ds(r * TH + ky, TH), kx:kx + Wo, :]
        # stride-2: wrapper exposes the padded input as a free (N, Hp/2, 2, Wp/2, 2*Pp)
        # parity view, so the strided gather becomes contiguous sublane slices and
        # 128-aligned lane slices only.
        lane0 = (kx % 2) * Pp
        return a_ref[0, pl.ds(r * TH + ky // 2, TH), ky % 2,
                     kx // 2:kx // 2 + Wo, lane0:lane0 + Pp]

    def kernel(a_ref, w2_ref, s3_ref, b3_ref, w3_ref, *rest):
        if has_proj:
            x_ref, s1_ref, b1_ref, wsc_ref, o_ref = rest
        else:
            x_ref, o_ref = rest
        r = pl.program_id(1)

        # 3x3 conv as ONE long-K matmul: (TH*Wo, 9*Pp) patch built in VMEM.
        taps = [tap(a_ref, r, ky, kx) for ky in range(3) for kx in range(3)]
        patch = jnp.concatenate(taps, axis=-1).reshape(TH * Wo, 9 * Pp)
        h = jnp.dot(patch, w2_ref[...], preferred_element_type=jnp.float32)
        # fused bn3 + relu epilogue (f32)
        h = jnp.maximum(h * s3_ref[...] + b3_ref[...], 0.0)
        # conv3 (1x1)
        out = jnp.dot(h.astype(jnp.bfloat16), w3_ref[...],
                      preferred_element_type=jnp.float32)
        # fused shortcut (projection or identity), residual add in f32
        if has_proj:
            if s == 1:
                xs = x_ref[0].reshape(TH * Wo, CinP)
            else:
                xs = x_ref[0, :, 0, :, :CinP].reshape(TH * Wo, CinP)
            a1 = jnp.maximum(xs * s1_ref[...] + b1_ref[...], 0.0).astype(jnp.bfloat16)
            out = out + jnp.dot(a1, wsc_ref[...], preferred_element_type=jnp.float32)
        else:
            xi = x_ref[0]
            out = out + xi.reshape(TH * Wo, xi.shape[-1])
        o_ref[0] = out.astype(o_ref.dtype)

    return kernel


def conv2_conv3_shortcut(a2, xp, w2m, s3, b3, w3, proj, stride):
    """Fused tail: 3x3 conv (stride folded) + bn3 + relu + conv3(1x1) + shortcut add.

    a2  : (N, H, W, Pp) bf16 -- relu(bn2(conv1(relu(bn1(x)))))
    xp  : (N, H, W, CinP) f32 -- channel-padded input (shortcut source)
    proj: None for identity shortcut, else (s1, b1, wsc) for the 1x1 projection.
    Returns (N, Ho*Wo, CoutP) f32.
    """
    N, H, W, Pp = a2.shape
    CoutP = w3.shape[1]
    s = stride
    Ho = (H - 1) // s + 1
    Wo = (W - 1) // s + 1

    TH = min(Ho, 8)
    while Ho % TH:
        TH -= 1
    if (TH * Wo) % 8 and TH != Ho:
        TH = Ho
    n_rt = Ho // TH

    if s == 1:
        Hp = H + 2
        Wpp = _round_up(W + 2, 8)
        a_view = jnp.pad(a2, ((0, 0), (1, 1), (1, Wpp - W - 1), (0, 0)))
        a_spec = pl.BlockSpec((1, Hp, Wpp, Pp), lambda n, r: (n, 0, 0, 0))
        CinP = xp.shape[-1]
        x_view = xp
        x_spec = pl.BlockSpec((1, TH, W, CinP), lambda n, r: (n, r, 0, 0))
    else:
        if H % 2 or W % 2:                      # make the parity view a pure metadata reshape
            xp = jnp.pad(xp, ((0, 0), (0, H % 2), (0, W % 2), (0, 0)))
        CinP = xp.shape[-1]
        Hx, Wx = xp.shape[1], xp.shape[2]
        x_view = xp.reshape(N, Hx // 2, 2, Wx // 2, 2 * CinP)        # free reshape
        x_spec = pl.BlockSpec((1, TH, 2, Wx // 2, 2 * CinP),
                              lambda n, r: (n, r, 0, 0, 0))
        Hp = 2 * Ho + 2
        Wpp = _round_up(2 * Wo + 2, 16)         # sublane-friendly halo width
        # TODO(synk): halo pad is one extra XLA pass over a2; in-kernel edge masking would remove it.
        a_pad = jnp.pad(a2, ((0, 0), (1, Hp - H - 1), (1, Wpp - W - 1), (0, 0)))
        a_view = a_pad.reshape(N, Hp // 2, 2, Wpp // 2, 2 * Pp)      # free reshape
        a_spec = pl.BlockSpec((1, Hp // 2, 2, Wpp // 2, 2 * Pp),
                              lambda n, r: (n, 0, 0, 0, 0))

    kernel = _make_tail_kernel(s, TH, Wo, Pp, CinP, proj is not None)

    const2 = lambda n, r: (0, 0)
    in_specs = [a_spec,
                pl.BlockSpec((9 * Pp, Pp), const2),
                pl.BlockSpec((1, Pp), const2),
                pl.BlockSpec((1, Pp), const2),
                pl.BlockSpec((Pp, CoutP), const2),
                x_spec]
    args = [a_view, w2m, s3.reshape(1, Pp), b3.reshape(1, Pp), w3, x_view]
    if proj is not None:
        s1, b1, wsc = proj
        in_specs += [pl.BlockSpec((1, CinP), const2),
                     pl.BlockSpec((1, CinP), const2),
                     pl.BlockSpec((CinP, CoutP), const2)]
        args += [s1.reshape(1, CinP), b1.reshape(1, CinP), wsc]

    return pl.pallas_call(
        kernel,
        out_shape=jax.ShapeDtypeStruct((N, Ho * Wo, CoutP), jnp.float32),
        grid=(N, n_rt),
        in_specs=in_specs,
        out_specs=pl.BlockSpec((1, TH * Wo, CoutP), lambda n, r: (n, r, 0)),
        compiler_params=pltpu.CompilerParams(
            dimension_semantics=("parallel", "parallel"),
            vmem_limit_bytes=VMEM_LIMIT),
    )(*args)


# ----------------------------- parameters -----------------------------

def init_params(key, in_planes, planes, stride):
    def bn(k, c):
        kw, kb, km, kv = jax.random.split(k, 4)
        return dict(
            gamma=jax.random.uniform(kw, (c,), jnp.float32, 0.5, 1.5),
            beta=0.1 * jax.random.normal(kb, (c,), jnp.float32),
            mean=0.1 * jax.random.normal(km, (c,), jnp.float32),
            var=jax.random.uniform(kv, (c,), jnp.float32, 0.5, 1.5),
        )

    k1, k2, k3, kc1, kc2, kc3, ksc = jax.random.split(key, 7)
    cout = EXPANSION * planes
    p = dict(
        bn1=bn(k1, in_planes),
        bn2=bn(k2, planes),
        bn3=bn(k3, planes),
        conv1=0.3 * jax.random.normal(kc1, (planes, in_planes, 1, 1), jnp.float32),
        conv2=0.1 * jax.random.normal(kc2, (planes, planes, 3, 3), jnp.float32),
        conv3=0.3 * jax.random.normal(kc3, (cout, planes, 1, 1), jnp.float32),
    )
    if stride != 1 or in_planes != cout:
        p["shortcut"] = 0.3 * jax.random.normal(ksc, (cout, in_planes, 1, 1), jnp.float32)
    return p


def _bn_fold(bn):
    scale = bn["gamma"] / jnp.sqrt(bn["var"] + EPS)
    shift = bn["beta"] - bn["mean"] * scale
    return scale, shift


# ----------------------------- forward -----------------------------

def preact_bottleneck_forward(x_nchw, params, stride):
    N, Cin, H, W = x_nchw.shape
    planes = params["conv1"].shape[0]
    cout = params["conv3"].shape[0]
    CinP = _round_up(Cin, LANE)
    Pp = _round_up(planes, LANE)
    CoutP = _round_up(cout, LANE)
    # TODO(synk): on v6e/v7x, padding tiny channel counts to 256 would fill the 2x256x256
    #             MXU better; kept at 128 (conv2 already runs at K = 9*Pp = 1152).

    # NHWC with lane-padded channels; padded channels stay exactly zero end-to-end.
    xp = _pad_to(jnp.transpose(x_nchw, (0, 2, 3, 1)).astype(jnp.float32),
                 (N, H, W, CinP))

    s1, b1 = _bn_fold(params["bn1"])
    s2, b2 = _bn_fold(params["bn2"])
    s3, b3 = _bn_fold(params["bn3"])
    s1 = _pad_to(s1, (CinP,)); b1 = _pad_to(b1, (CinP,))
    s2 = _pad_to(s2, (Pp,));   b2 = _pad_to(b2, (Pp,))
    s3 = _pad_to(s3, (Pp,));   b3 = _pad_to(b3, (Pp,))

    # weights as bf16 MXU operands (f32 accumulation inside the kernels)
    w1 = _pad_to(jnp.transpose(params["conv1"][:, :, 0, 0]),
                 (CinP, Pp)).astype(jnp.bfloat16)
    w2m = _pad_to(jnp.transpose(params["conv2"], (2, 3, 1, 0)).reshape(9, planes, planes),
                  (9, Pp, Pp)).reshape(9 * Pp, Pp).astype(jnp.bfloat16)
    w3 = _pad_to(jnp.transpose(params["conv3"][:, :, 0, 0]),
                 (Pp, CoutP)).astype(jnp.bfloat16)

    # kernel A: conv1 (1x1), bn1+relu pre-activation and bn2+relu epilogue fused, bf16 out.
    a2 = conv1_bn_relu(xp.reshape(N * H * W, CinP), s1, b1, w1, s2, b2)
    a2 = a2.reshape(N, H, W, Pp)

    if "shortcut" in params:
        wsc = _pad_to(jnp.transpose(params["shortcut"][:, :, 0, 0]),
                      (CinP, CoutP)).astype(jnp.bfloat16)
        proj = (s1, b1, wsc)
    else:
        proj = None

    # kernel B: fused conv2 (3x3, stride folded) + bn3 + relu + conv3 (1x1) + shortcut add.
    out = conv2_conv3_shortcut(a2, xp, w2m, s3, b3, w3, proj, stride)

    Ho = (H - 1) // stride + 1
    Wo = (W - 1) // stride + 1
    out = out.reshape(N, Ho, Wo, CoutP)[..., :cout]
    return jnp.transpose(out, (0, 3, 1, 2))                 # NCHW


# ----------------------------- pure-JAX reference -----------------------------

def reference_forward(x_nchw, params, stride):
    # Conv operands are cast to bf16 at the same points as in the Pallas kernels
    # (accumulation stays f32), so the comparison remains tight.
    def bn_relu(x, bn):
        s, b = _bn_fold(bn)
        return jnp.maximum(x * s[None, :, None, None] + b[None, :, None, None], 0.0)

    def conv(x, w, s, pad):
        return jax.lax.conv_general_dilated(
            x.astype(jnp.bfloat16), w.astype(jnp.bfloat16), (s, s), pad,
            dimension_numbers=("NCHW", "OIHW", "NCHW"),
            preferred_element_type=jnp.float32)

    out = bn_relu(x_nchw, params["bn1"])
    if "shortcut" in params:
        shortcut = conv(out, params["shortcut"], stride, "VALID")
    else:
        shortcut = x_nchw
    out = conv(out, params["conv1"], 1, "VALID")
    out = conv(bn_relu(out, params["bn2"]), params["conv2"], stride, [(1, 1), (1, 1)])
    out = conv(bn_relu(out, params["bn3"]), params["conv3"], 1, "VALID")
    return out + shortcut


# ----------------------------- main -----------------------------

if __name__ == "__main__":
    key = jax.random.PRNGKey(0)
    N, in_planes, H, W = 2, 4, 16, 16
    planes, stride = 4, 2

    kx, kp = jax.random.split(key)
    x = jax.random.normal(kx, (N, in_planes, H, W), jnp.float32)
    params = init_params(kp, in_planes, planes, stride)

    out = preact_bottleneck_forward(x, params, stride)
    out = jax.block_until_ready(out)

    Ho = (H - 1) // stride + 1
    assert out.shape == (N, EXPANSION * planes, Ho, Ho), out.shape

    ref = reference_forward(x, params, stride)
    max_err = float(jnp.max(jnp.abs(out - ref)))
    assert jnp.allclose(out, ref, atol=1e-2, rtol=1e-2), max_err

    print("KERNEL_OK")
</pallas_src>

<mosaic_0001>
module attributes {stable_mosaic.version = 11 : i64} {
  func.func @_conv1_kernel(%arg0: i32, %arg1: memref<512x128xf32, #tpu.memory_space<vmem>>, %arg2: memref<1x128xf32, #tpu.memory_space<vmem>>, %arg3: memref<1x128xf32, #tpu.memory_space<vmem>>, %arg4: memref<128x128xbf16, #tpu.memory_space<vmem>>, %arg5: memref<1x128xf32, #tpu.memory_space<vmem>>, %arg6: memref<1x128xf32, #tpu.memory_space<vmem>>, %arg7: memref<512x128xbf16, #tpu.memory_space<vmem>>) attributes {dimension_semantics = [#tpu.dimension_semantics<parallel>], iteration_bounds = array<i64: 1>, scalar_prefetch = 0 : i64, scratch_operands = 0 : i64, tpu.core_type = #tpu.core_type<tc>, window_params = [{transform_indices = @transform_0, window_bounds = array<i64: 512, 128>}, {pipeline_mode = #tpu.pipeline_mode<synchronous>, transform_indices = @transform_1, window_bounds = array<i64: 1, 128>}, {pipeline_mode = #tpu.pipeline_mode<synchronous>, transform_indices = @transform_2, window_bounds = array<i64: 1, 128>}, {pipeline_mode = #tpu.pipeline_mode<synchronous>, transform_indices = @transform_3, window_bounds = array<i64: 128, 128>}, {pipeline_mode = #tpu.pipeline_mode<synchronous>, transform_indices = @transform_4, window_bounds = array<i64: 1, 128>}, {pipeline_mode = #tpu.pipeline_mode<synchronous>, transform_indices = @transform_5, window_bounds = array<i64: 1, 128>}, {transform_indices = @transform_6, window_bounds = array<i64: 512, 128>}]} {
    %c0 = arith.constant 0 : index
    %c0_0 = arith.constant 0 : index
    %0 = vector.load %arg1[%c0, %c0_0] : memref<512x128xf32, #tpu.memory_space<vmem>>, vector<512x128xf32>
    %c0_1 = arith.constant 0 : index
    %c0_2 = arith.constant 0 : index
    %1 = vector.load %arg2[%c0_1, %c0_2] : memref<1x128xf32, #tpu.memory_space<vmem>>, vector<1x128xf32>
    %2 = vector.broadcast %1 : vector<1x128xf32> to vector<512x128xf32>
    %3 = arith.mulf %0, %2 : vector<512x128xf32>
    %c0_3 = arith.constant 0 : index
    %c0_4 = arith.constant 0 : index
    %4 = vector.load %arg3[%c0_3, %c0_4] : memref<1x128xf32, #tpu.memory_space<vmem>>, vector<1x128xf32>
    %5 = vector.broadcast %4 : vector<1x128xf32> to vector<512x128xf32>
    %6 = arith.addf %3, %5 : vector<512x128xf32>
    %cst = arith.constant 0.000000e+00 : f32
    %7 = vector.broadcast %cst : f32 to vector<512x128xf32>
    %8 = arith.maximumf %6, %7 : vector<512x128xf32>
    %9 = arith.truncf %8 : vector<512x128xf32> to vector<512x128xbf16>
    %c0_5 = arith.constant 0 : index
    %c0_6 = arith.constant 0 : index
    %10 = vector.load %arg4[%c0_5, %c0_6] : memref<128x128xbf16, #tpu.memory_space<vmem>>, vector<128x128xbf16>
    %cst_7 = arith.constant dense<0.000000e+00> : vector<512x128xf32>
    %11 = tpu.matmul %9, %10, %cst_7 {dimension_numbers = #tpu.dot_dimension_numbers<[1], [0], [0], [1], [0, 0, 1, 1], [], []>} : vector<512x128xbf16>, vector<128x128xbf16>, vector<512x128xf32> -> vector<512x128xf32>
    %c0_8 = arith.constant 0 : index
    %c0_9 = arith.constant 0 : index
    %12 = vector.load %arg5[%c0_8, %c0_9] : memref<1x128xf32, #tpu.memory_space<vmem>>, vector<1x128xf32>
    %13 = vector.broadcast %12 : vector<1x128xf32> to vector<512x128xf32>
    %14 = arith.mulf %11, %13 : vector<512x128xf32>
    %c0_10 = arith.constant 0 : index
    %c0_11 = arith.constant 0 : index
    %15 = vector.load %arg6[%c0_10, %c0_11] : memref<1x128xf32, #tpu.memory_space<vmem>>, vector<1x128xf32>
    %16 = vector.broadcast %15 : vector<1x128xf32> to vector<512x128xf32>
    %17 = arith.addf %14, %16 : vector<512x128xf32>
    %cst_12 = arith.constant 0.000000e+00 : f32
    %18 = vector.broadcast %cst_12 : f32 to vector<512x128xf32>
    %19 = arith.maximumf %17, %18 : vector<512x128xf32>
    %20 = arith.truncf %19 : vector<512x128xf32> to vector<512x128xbf16>
    %c0_13 = arith.constant 0 : index
    %c0_14 = arith.constant 0 : index
    %21 = vector.load %arg7[%c0_13, %c0_14] : memref<512x128xbf16, #tpu.memory_space<vmem>>, vector<512x128xbf16>
    tpu.vector_store %arg7[%c0_13, %c0_14], %20 {strides = array<i32>} : memref<512x128xbf16, #tpu.memory_space<vmem>>, vector<512x128xbf16>,
    return
  }
  func.func @transform_0(%arg0: i32) -> (i32, i32) {
    %c0_i32 = arith.constant 0 : i32
    %c0_i32_0 = arith.constant 0 : i32
    return %arg0, %c0_i32 : i32, i32
  }
  func.func @transform_1(%arg0: i32) -> (i32, i32) {
    %c0_i32 = arith.constant 0 : i32
    %c0_i32_0 = arith.constant 0 : i32
    %c0_i32_1 = arith.constant 0 : i32
    return %c0_i32, %c0_i32_0 : i32, i32
  }
  func.func @transform_2(%arg0: i32) -> (i32, i32) {
    %c0_i32 = arith.constant 0 : i32
    %c0_i32_0 = arith.constant 0 : i32
    %c0_i32_1 = arith.constant 0 : i32
    return %c0_i32, %c0_i32_0 : i32, i32
  }
  func.func @transform_3(%arg0: i32) -> (i32, i32) {
    %c0_i32 = arith.constant 0 : i32
    %c0_i32_0 = arith.constant 0 : i32
    %c0_i32_1 = arith.constant 0 : i32
    return %c0_i32, %c0_i32_0 : i32, i32
  }
  func.func @transform_4(%arg0: i32) -> (i32, i32) {
    %c0_i32 = arith.constant 0 : i32
    %c0_i32_0 = arith.constant 0 : i32
    %c0_i32_1 = arith.constant 0 : i32
    return %c0_i32, %c0_i32_0 : i32, i32
  }
  func.func @transform_5(%arg0: i32) -> (i32, i32) {
    %c0_i32 = arith.constant 0 : i32
    %c0_i32_0 = arith.constant 0 : i32
    %c0_i32_1 = arith.constant 0 : i32
    return %c0_i32, %c0_i32_0 : i32, i32
  }
  func.func @transform_6(%arg0: i32) -> (i32, i32) {
    %c0_i32 = arith.constant 0 : i32
    %c0_i32_0 = arith.constant 0 : i32
    return %arg0, %c0_i32 : i32, i32
  }
}

</mosaic_0001>

<bundles_post_ra>
// kernel: tpu_custom_call.1
= control target key start
LH: loop header
LB: loop body
LE: loop exit
PB: predicated region body
PF: predicated region fallthrough
CT: control target
= control target key end

     0   :  { %11 = vsyncpa [#allocation3], 0  ;;  %s2207_s0 = inlined_call_operand.hbm [shape: f32[512,128], index: 0, kind: input, shape index: {}]   ;;  %s2208_s1 = inlined_call_operand.vmem [shape: f32[1,128], index: 1, kind: input, shape index: {}]   ;;  %s2209_s2 = inlined_call_operand.vmem [shape: f32[1,128], index: 2, kind: input, shape index: {}]   ;;  %s2210_s3 = inlined_call_operand.hbm [shape: bf16[128,128], index: 3, kind: input, shape index: {}]   ;;  %s2211_s4 = inlined_call_operand.vmem [shape: f32[1,128], index: 4, kind: input, shape index: {}]   ;;  %s2212_s5 = inlined_call_operand.vmem [shape: f32[1,128], index: 5, kind: input, shape index: {}]   ;;  %s2213_s6 = inlined_call_operand.hbm [shape: bf16[512,128], index: 6, kind: output, shape index: {}]  }
   0x1   :  { %12 = vsyncpa [#allocation6], 0 }
   0x2   :  { %13 = vsyncpa [#allocation4], 0  ;;  %s1806_s21 = smov [#allocation2]   ;;  %s1734_s25 = scalar_lea.hbm %s2207_s0, 8192 }
   0x3   :  { %s19_s22 = sshll.u32 %s1806_s21, 4  ;;  %p1735_p0 = scmp.ne.s32.totalorder %s2207_s0, %s1734_s25  ;;  %s20_s22 = int_to_ptr.vmem [resolvable:$true] %s19_s22 }
   0x4   :  { %p1738_p1 = scmp.lt.u32.totalorder %s1734_s25, %s2207_s0 }
   0x6   :  { %p1740_p2 = pnand %p1738_p1, %p1735_p0 }
   0x8   :  { %1743 = shalt.err (!%p1740_p2)
}
   0x9   :  { %s1744_s30 = scalar_lea.vmem %s20_s22, 8192  ;;  %p1749_p4 = scmp.lt.s32.totalorder %s20_s22, %s20_s22 }
   0xa   :  { %p1745_p3 = scmp.ne.s32.totalorder %s20_s22, %s1744_s30  ;;  %p1750_p5 = scmp.lt.s32.totalorder %s1744_s30, %s1744_s30 }
   0xc   :  { %p1751_p6 = por %p1750_p5, %p1749_p4 }
   0xe   :  { %p1752_p7 = pnand %p1751_p6, %p1745_p3 }
  0x10   :  { %1755 = shalt.err (!%p1752_p7)
}
  0x11   :  { %s1807_s7 = smov 128   ;;  %s1808_s8 = smov 8  }
  0x12   :  { %25 = dma.hbm_to_vmem [thread:$0]  %s2207_s0, 8192, %s20_s22, [#allocation3], %s1807_s7, %s1807_s7, %s1808_s8  }
  0x13   :  { %s1809_s11 = smov [#allocation5]   ;;  %s1756_s15 = scalar_lea.hbm %s2210_s3, 1024 }
  0x14   :  { %s35_s12 = sshll.u32 %s1809_s11, 4  ;;  %p1757_p8 = scmp.ne.s32.totalorder %s2210_s3, %s1756_s15  ;;  %s36_s12 = int_to_ptr.vmem [resolvable:$true] %s35_s12 }
  0x15   :  { %p1760_p9 = scmp.lt.u32.totalorder %s1756_s15, %s2210_s3 }
  0x17   :  { %p1762_p10 = pnand %p1760_p9, %p1757_p8 }
  0x19   :  { %1765 = shalt.err (!%p1762_p10)
}
  0x1a   :  { %s1766_s20 = scalar_lea.vmem %s36_s12, 1024  ;;  %p1771_p12 = scmp.lt.s32.totalorder %s36_s12, %s36_s12 }
  0x1b   :  { %p1767_p11 = scmp.ne.s32.totalorder %s36_s12, %s1766_s20  ;;  %p1772_p13 = scmp.lt.s32.totalorder %s1766_s20, %s1766_s20 }
  0x1d   :  { %p1773_p0 = por %p1772_p13, %p1771_p12 }
  0x1f   :  { %p1774_p1 = pnand %p1773_p0, %p1767_p11 }
  0x21   :  { %1777 = shalt.err (!%p1774_p1)
}
  0x22   :  { %s1810_s0 = smov 64   ;;  %s1811_s21 = smov 4  }
  0x23   :  { %41 = dma.hbm_to_vmem [thread:$0]  %s2210_s3, 1024, %s36_s12, [#allocation6], %s1810_s0, %s1810_s0, %s1811_s21  }
  0x24   :  { %1800 = dma.done.wait [#allocation3], 8192  }
  0x25   :  { %1801 = vsyncadd [#allocation3], 4294959104 }
  0x26   :  { %1802 = dma.done.wait [#allocation6], 1024  }
  0x27   :  { %1803 = vsyncadd [#allocation6], 4294966272  ;;  %v1726_v0 = vld [vmem:[#allocation5] sm:$0xff]   ;;  %v1727_v1 = vld [vmem:[#allocation5 + $0x8] sm:$0xff]  }
  0x28   :  { %1623 = vmatprep.subr.bf16.mxu0 %v1726_v0  ;;  %1703 = vmatprep.subr.bf16.mxu1 %v1726_v0  ;;  %v1728_v2 = vld [vmem:[#allocation5 + $0x10] sm:$0xff]   ;;  %v1729_v3 = vld [vmem:[#allocation5 + $0x18] sm:$0xff]   ;;  %v53_v4 = vld [vmem:[#allocation2] sm:$0xff] }
  0x29   :  { %1624 = vmatpush3.bf16.msra.mxu0 %v1726_v0  ;;  %1711 = vmatpush3.bf16.msra.mxu1 %v1726_v0  ;;  %v54_v5 = vld [vmem:[#allocation2 + $0x8] sm:$0xff]  ;;  %v1878_v6 = vld [vmem:[%s2208_s1] ss:$0 sm:$0xff]  ;;  %v55_v14 = vld [vmem:[#allocation2 + $0x10] sm:$0xff] }
  0x2a   :  { %1625 = vmatprep.subr.bf16.mxu0 %v1727_v1  ;;  %1704 = vmatprep.subr.bf16.mxu1 %v1727_v1  ;;  %v124_v7 = vmul.f32 %v1878_v6, %v53_v4  ;;  %v125_v8 = vmul.f32 %v1878_v6, %v54_v5  ;;  %v1885_v9 = vld [vmem:[%s2209_s2] ss:$0 sm:$0xff]  ;;  %v86_v11 = vld [vmem:[#allocation2 + $0x108] sm:$0xff]  ;;  %v56_v15 = vld [vmem:[#allocation2 + $0x18] sm:$0xff]  ;;  %v126_v19 = vmul.f32 %v1878_v6, %v55_v14 }
  0x2b   :  { %v85_v10 = vld [vmem:[#allocation2 + $0x100] sm:$0xff]  ;;  %v157_v13 = vmul.f32 %v1878_v6, %v86_v11  ;;  %v87_v16 = vld [vmem:[#allocation2 + $0x110] sm:$0xff]  ;;  %v88_v20 = vld [vmem:[#allocation2 + $0x118] sm:$0xff]  ;;  %v127_v24 = vmul.f32 %v1878_v6, %v56_v15 }
  0x2c   :  { %v156_v12 = vmul.f32 %v1878_v6, %v85_v10  ;;  %v195_v17 = vadd.f32 %v1885_v9, %v124_v7  ;;  %v196_v18 = vadd.f32 %v1885_v9, %v125_v8  ;;  %v1730_v21 = vld [vmem:[#allocation5 + $0x20] sm:$0xff]   ;;  %v158_v28 = vmul.f32 %v1878_v6, %v87_v16  ;;  %v58_v29 = vld [vmem:[#allocation2 + $0x28] sm:$0xff]  ;;  %v59_v38 = vld [vmem:[#allocation2 + $0x30] sm:$0xff] }
  0x2d   :  { %1626 = vmatpush3.bf16.msra.mxu0 %v1727_v1  ;;  %1712 = vmatpush3.bf16.msra.mxu1 %v1727_v1  ;;  %v228_v23 = vadd.f32 %v1885_v9, %v157_v13  ;;  %v57_v25 = vld [vmem:[#allocation2 + $0x20] sm:$0xff]  ;;  %v159_v32 = vmul.f32 %v1878_v6, %v88_v20  ;;  %v90_v34 = vld [vmem:[#allocation2 + $0x128] sm:$0xff]  ;;  %v197_v36 = vadd.f32 %v1885_v9, %v126_v19  ;;  %v60_v43 = vld [vmem:[#allocation2 + $0x38] sm:$0xff] }
  0x2e   :  { %1627 = vmatprep.subr.bf16.mxu0 %v1728_v2  ;;  %1705 = vmatprep.subr.bf16.mxu1 %v1728_v2  ;;  %v227_v22 = vadd.f32 %v1885_v9, %v156_v12  ;;  %v259_v26 = vmax.f32 %v195_v17, 0.0  ;;  %v260_v27 = vmax.f32 %v196_v18, 0.0  ;;  %v89_v33 = vld [vmem:[#allocation2 + $0x120] sm:$0xff]  ;;  %v128_v37 = vmul.f32 %v1878_v6, %v57_v25  ;;  %v1731_v39 = vld [vmem:[#allocation5 + $0x28] sm:$0xff]   ;;  %v91_v47 = vld [vmem:[#allocation2 + $0x130] sm:$0xff] }
  0x2f   :  { %v292_v31 = vmax.f32 %v228_v23, 0.0  ;;  %v198_v41 = vadd.f32 %v1885_v9, %v127_v24  ;;  %v129_v42 = vmul.f32 %v1878_v6, %v58_v29  ;;  %v229_v44 = vadd.f32 %v1885_v9, %v158_v28  ;;  %v92_v52 = vld [vmem:[#allocation2 + $0x138] sm:$0xff]  ;;  %v1732_v56 = vld [vmem:[#allocation5 + $0x30] sm:$0xff]   ;;  %v61_v61 = vld [vmem:[#allocation2 + $0x40] sm:$0xff] }
  0x30   :  { %v291_v30 = vmax.f32 %v227_v22, 0.0  ;;  %v323_v35 = vpack.c.bf16 %v260_v27, %v259_v26  ;;  %v160_v45 = vmul.f32 %v1878_v6, %v89_v33  ;;  %v161_v46 = vmul.f32 %v1878_v6, %v90_v34  ;;  %v62_v1 = vld [vmem:[#allocation2 + $0x48] sm:$0xff]  ;;  %v93_v7 = vld [vmem:[#allocation2 + $0x140] sm:$0xff]  ;;  %v63_v14 = vld [vmem:[#allocation2 + $0x50] sm:$0xff] }
  0x31   :  { %1628 = vmatpush3.bf16.msra.mxu0 %v1728_v2  ;;  %1713 = vmatpush3.bf16.msra.mxu1 %v1728_v2  ;;  %v230_v48 = vadd.f32 %v1885_v9, %v159_v32  ;;  %v199_v49 = vadd.f32 %v1885_v9, %v128_v37  ;;  %v200_v50 = vadd.f32 %v1885_v9, %v129_v42  ;;  %v261_v57 = vmax.f32 %v197_v36, 0.0  ;;  %v94_v8 = vld [vmem:[#allocation2 + $0x148] sm:$0xff]  ;;  %v64_v15 = vld [vmem:[#allocation2 + $0x58] sm:$0xff] }
  0x32   :  { %1629 = vmatprep.subr.bf16.mxu0 %v1729_v3  ;;  %1706 = vmatprep.subr.bf16.mxu1 %v1729_v3  ;;  %v339_v40 = vpack.c.bf16 %v292_v31, %v291_v30  ;;  %v130_v51 = vmul.f32 %v1878_v6, %v59_v38  ;;  %v231_v53 = vadd.f32 %v1885_v9, %v160_v45  ;;  %v262_v58 = vmax.f32 %v198_v41, 0.0  ;;  %v1733_v16 = vld [vmem:[#allocation5 + $0x38] sm:$0xff]   ;;  %v65_v31 = vld [vmem:[#allocation2 + $0x60] sm:$0xff]  ;;  %v67_v45 = vld [vmem:[#allocation2 + $0x70] sm:$0xff] }
  0x33   :  { %1639 = vmatprep.mubr.bf16.mxu0 %v323_v35  ;;  %v232_v54 = vadd.f32 %v1885_v9, %v161_v46  ;;  %v131_v55 = vmul.f32 %v1878_v6, %v60_v43  ;;  %v162_v60 = vmul.f32 %v1878_v6, %v91_v47  ;;  %v293_v62 = vmax.f32 %v229_v44, 0.0  ;;  %v96_v26 = vld [vmem:[#allocation2 + $0x158] sm:$0xff]  ;;  %v66_v35 = vld [vmem:[#allocation2 + $0x68] sm:$0xff] }
  0x34   :  { %1671 = vmatprep.mubr.bf16.mxu1 %v339_v40  ;;  %v201_v59 = vadd.f32 %v1885_v9, %v130_v51  ;;  %v163_v0 = vmul.f32 %v1878_v6, %v92_v52  ;;  %v294_v2 = vmax.f32 %v230_v48, 0.0  ;;  %v264_v4 = vmax.f32 %v200_v50, 0.0  ;;  %v98_v40 = vld [vmem:[#allocation2 + $0x168] sm:$0xff]  ;;  %v68_v50 = vld [vmem:[#allocation2 + $0x78] sm:$0xff] }
  0x35   :  { %1630 = vmatpush3.bf16.msra.mxu0 %v1729_v3  ;;  %1714 = vmatpush3.bf16.msra.mxu1 %v1729_v3  ;;  %v202_v63 = vadd.f32 %v1885_v9, %v131_v55  ;;  %v263_v3 = vmax.f32 %v199_v49, 0.0  ;;  %v233_v5 = vadd.f32 %v1885_v9, %v162_v60  ;;  %v295_v10 = vmax.f32 %v231_v53, 0.0 }
  0x36   :  { %1631 = vmatprep.subr.bf16.mxu0 %v1730_v21  ;;  %1707 = vmatprep.subr.bf16.mxu1 %v1730_v21  ;;  %v296_v11 = vmax.f32 %v232_v54, 0.0  ;;  %v234_v12 = vadd.f32 %v1885_v9, %v163_v0  ;;  %v132_v13 = vmul.f32 %v1878_v6, %v61_v61  ;;  %v324_v17 = vpack.c.bf16 %v262_v58, %v261_v57 }
  0x37   :  { %v265_v18 = vmax.f32 %v201_v59, 0.0  ;;  %v266_v19 = vmax.f32 %v202_v63, 0.0  ;;  %v133_v20 = vmul.f32 %v1878_v6, %v62_v1  ;;  %v297_v22 = vmax.f32 %v233_v5, 0.0  ;;  %v99_v59 = vld [vmem:[#allocation2 + $0x170] sm:$0xff]  ;;  %v69_v5 = vld [vmem:[#allocation2 + $0x80] sm:$0xff] }
  0x38   :  { %v298_v23 = vmax.f32 %v234_v12, 0.0  ;;  %v164_v24 = vmul.f32 %v1878_v6, %v93_v7  ;;  %v165_v25 = vmul.f32 %v1878_v6, %v94_v8  ;;  %v340_v27 = vpack.c.bf16 %v294_v2, %v293_v62  ;;  %v70_v12 = vld [vmem:[#allocation2 + $0x88] sm:$0xff] }
  0x39   :  { %1632 = vmatpush3.bf16.msra.mxu0 %v1730_v21  ;;  %1715 = vmatpush3.bf16.msra.mxu1 %v1730_v21  ;;  %v95_v21 = vld [vmem:[#allocation2 + $0x150] sm:$0xff]  ;;  %v325_v28 = vpack.c.bf16 %v264_v4, %v263_v3  ;;  %v134_v29 = vmul.f32 %v1878_v6, %v63_v14  ;;  %v135_v30 = vmul.f32 %v1878_v6, %v64_v15  ;;  %v100_v4 = vld [vmem:[#allocation2 + $0x178] sm:$0xff] }
  0x3a   :  { %1633 = vmatprep.subr.bf16.mxu0 %v1731_v39  ;;  %1708 = vmatprep.subr.bf16.mxu1 %v1731_v39  ;;  %v341_v32 = vpack.c.bf16 %v296_v11, %v295_v10  ;;  %v1924_v33 = vadd.f32 %v1885_v9, %v132_v13  ;;  %v166_v34 = vmul.f32 %v1878_v6, %v95_v21  ;;  %v101_v13 = vld [vmem:[#allocation2 + $0x180] sm:$0xff] }
  0x3b   :  { %v1927_v36 = vpack.c.bf16 %v266_v19, %v265_v18  ;;  %v204_v37 = vadd.f32 %v1885_v9, %v133_v20  ;;  %v167_v38 = vmul.f32 %v1878_v6, %v96_v26  ;;  %v1931_v41 = vpack.c.bf16 %v298_v23, %v297_v22  ;;  %v102_v18 = vld [vmem:[#allocation2 + $0x188] sm:$0xff]  ;;  %v71_v19 = vld [vmem:[#allocation2 + $0x90] sm:$0xff] }
  0x3c   :  { %v235_v42 = vadd.f32 %v1885_v9, %v164_v24  ;;  %v236_v43 = vadd.f32 %v1885_v9, %v165_v25  ;;  %v136_v44 = vmul.f32 %v1878_v6, %v65_v31  ;;  %v205_v46 = vadd.f32 %v1885_v9, %v134_v29  ;;  %v72_v24 = vld [vmem:[#allocation2 + $0x98] sm:$0xff]  ;;  %v103_v29 = vld [vmem:[#allocation2 + $0x190] sm:$0xff] }
  0x3d   :  { %1634 = vmatpush3.bf16.msra.mxu0 %v1731_v39  ;;  %1716 = vmatpush3.bf16.msra.mxu1 %v1731_v39  ;;  %v97_v39 = vld [vmem:[#allocation2 + $0x160] sm:$0xff]  ;;  %v206_v47 = vadd.f32 %v1885_v9, %v135_v30  ;;  %v237_v48 = vadd.f32 %v1885_v9, %v166_v34  ;;  %v137_v49 = vmul.f32 %v1878_v6, %v66_v35  ;;  %v267_v51 = vmax.f32 %v1924_v33, 0.0  ;;  %v104_v34 = vld [vmem:[#allocation2 + $0x198] sm:$0xff] }
  0x3e   :  { %1635 = vmatprep.subr.bf16.mxu0 %v1732_v56  ;;  %1709 = vmatprep.subr.bf16.mxu1 %v1732_v56  ;;  %v238_v52 = vadd.f32 %v1885_v9, %v167_v38  ;;  %v168_v53 = vmul.f32 %v1878_v6, %v97_v39  ;;  %v169_v54 = vmul.f32 %v1878_v6, %v98_v40  ;;  %v268_v55 = vmax.f32 %v204_v37, 0.0  ;;  %v73_v40 = vld [vmem:[#allocation2 + $0xa0] sm:$0xff] }
  0x3f   :  { %v208_v57 = vadd.f32 %v1885_v9, %v137_v49  ;;  %v138_v58 = vmul.f32 %v1878_v6, %v67_v45  ;;  %v299_v60 = vmax.f32 %v235_v42, 0.0  ;;  %v139_v63 = vmul.f32 %v1878_v6, %v68_v50  ;;  %v105_v50 = vld [vmem:[#allocation2 + $0x1a0] sm:$0xff] }
  0x40   :  { %v239_v61 = vadd.f32 %v1885_v9, %v168_v53  ;;  %v240_v62 = vadd.f32 %v1885_v9, %v169_v54  ;;  %v300_v0 = vmax.f32 %v236_v43, 0.0  ;;  %v269_v1 = vmax.f32 %v205_v46, 0.0  ;;  %v74_v46 = vld [vmem:[#allocation2 + $0xa8] sm:$0xff] }
  0x41   :  { %1636 = vmatpush3.bf16.msra.mxu0 %v1732_v56  ;;  %1717 = vmatpush3.bf16.msra.mxu1 %v1732_v56  ;;  %v207_v56 = vadd.f32 %v1885_v9, %v136_v44  ;;  %v270_v2 = vmax.f32 %v206_v47, 0.0  ;;  %v209_v3 = vadd.f32 %v1885_v9, %v138_v58  ;;  %v301_v7 = vmax.f32 %v237_v48, 0.0 }
  0x42   :  { %1637 = vmatprep.subr.bf16.mxu0 %v1733_v16  ;;  %1710 = vmatprep.subr.bf16.mxu1 %v1733_v16  ;;  %v302_v8 = vmax.f32 %v238_v52, 0.0  ;;  %v210_v10 = vadd.f32 %v1885_v9, %v139_v63  ;;  %v170_v11 = vmul.f32 %v1878_v6, %v99_v59  ;;  %v272_v15 = vmax.f32 %v208_v57, 0.0 }
  0x43   :  { %v271_v14 = vmax.f32 %v207_v56, 0.0  ;;  %v273_v20 = vmax.f32 %v209_v3, 0.0  ;;  %v171_v22 = vmul.f32 %v1878_v6, %v100_v4  ;;  %v140_v23 = vmul.f32 %v1878_v6, %v69_v5 }
  0x44   :  { %v274_v21 = vmax.f32 %v210_v10, 0.0  ;;  %v327_v25 = vpack.c.bf16 %v268_v55, %v267_v51  ;;  %v343_v26 = vpack.c.bf16 %v300_v0, %v299_v60  ;;  %v328_v30 = vpack.c.bf16 %v270_v2, %v269_v1  ;;  %v106_v51 = vld [vmem:[#allocation2 + $0x1a8] sm:$0xff]  ;;  %v76_v2 = vld [vmem:[#allocation2 + $0xb8] sm:$0xff]  ;;  %v107_v10 = vld [vmem:[#allocation2 + $0x1b0] sm:$0xff] }
  0x45   :  { %1638 = vmatpush3.bf16.msra.mxu0 %v1733_v16  ;;  %1718 = vmatpush3.bf16.msra.mxu1 %v1733_v16  ;;  %v303_v16 = vmax.f32 %v239_v61, 0.0  ;;  %v241_v31 = vadd.f32 %v1885_v9, %v170_v11  ;;  %v142_v33 = vmul.f32 %v1878_v6, %v71_v19  ;;  %v344_v35 = vpack.c.bf16 %v302_v8, %v301_v7 }
  0x46   :  { %v329_v37 = vpack.c.bf16 %v272_v15, %v271_v14  ;;  %v143_v39 = vmul.f32 %v1878_v6, %v72_v24  ;;  %v1961_v42 = vpack.c.bf16 %v274_v21, %v273_v20  ;;  %v242_v43 = vadd.f32 %v1885_v9, %v171_v22  ;;  %v108_v15 = vld [vmem:[#allocation2 + $0x1b8] sm:$0xff]  ;;  %v77_v20 = vld [vmem:[#allocation2 + $0xc0] sm:$0xff]  ;;  %v78_v21 = vld [vmem:[#allocation2 + $0xc8] sm:$0xff] }
  0x47   :  { %v211_v44 = vadd.f32 %v1885_v9, %v140_v23  ;;  %v174_v45 = vmul.f32 %v1878_v6, %v103_v29  ;;  %v175_v49 = vmul.f32 %v1878_v6, %v104_v34  ;;  %v305_v52 = vmax.f32 %v241_v31, 0.0 }
  0x48   :  { %1640 = vmatmul.mubr.bf16.vlgmr.msra.gmra.mrb[0].mxu0 %v324_v17  ;;  %1672 = vmatmul.mubr.bf16.vlgmr.msra.gmra.mrb[0].mxu1 %v340_v27  ;;  %v304_v17 = vmax.f32 %v240_v62, 0.0  ;;  %v141_v27 = vmul.f32 %v1878_v6, %v70_v12  ;;  %v213_v54 = vadd.f32 %v1885_v9, %v142_v33  ;;  %v144_v55 = vmul.f32 %v1878_v6, %v73_v40  ;;  %v80_v33 = vld [vmem:[#allocation2 + $0xd8] sm:$0xff]  ;;  %v111_v40 = vld [vmem:[#allocation2 + $0x1d0] sm:$0xff] }
  0x49   :  { %1643 = vmatprep.mubr.bf16.mxu0 %v325_v28  ;;  %1675 = vmatprep.mubr.bf16.mxu1 %v341_v32  ;;  %v172_v28 = vmul.f32 %v1878_v6, %v101_v13  ;;  %v173_v32 = vmul.f32 %v1878_v6, %v102_v18  ;;  %v245_v56 = vadd.f32 %v1885_v9, %v174_v45  ;;  %v306_v59 = vmax.f32 %v242_v43, 0.0  ;;  %v112_v45 = vld [vmem:[#allocation2 + $0x1d8] sm:$0xff] }
  0x4a   :  { %v345_v38 = vpack.c.bf16 %v304_v17, %v303_v16  ;;  %v212_v47 = vadd.f32 %v1885_v9, %v141_v27  ;;  %v246_v57 = vadd.f32 %v1885_v9, %v175_v49  ;;  %v145_v58 = vmul.f32 %v1878_v6, %v74_v46 }
  0x4b   :  { %v243_v48 = vadd.f32 %v1885_v9, %v172_v28  ;;  %v244_v53 = vadd.f32 %v1885_v9, %v173_v32  ;;  %v215_v60 = vadd.f32 %v1885_v9, %v144_v55  ;;  %v176_v61 = vmul.f32 %v1878_v6, %v105_v50  ;;  %v110_v32 = vld [vmem:[#allocation2 + $0x1c8] sm:$0xff]  ;;  %v81_v50 = vld [vmem:[#allocation2 + $0xe0] sm:$0xff] }
  0x4c   :  { %v177_v62 = vmul.f32 %v1878_v6, %v106_v51  ;;  %v275_v63 = vmax.f32 %v211_v44, 0.0  ;;  %v276_v0 = vmax.f32 %v212_v47, 0.0  ;;  %v216_v1 = vadd.f32 %v1885_v9, %v145_v58  ;;  %v82_v55 = vld [vmem:[#allocation2 + $0xe8] sm:$0xff]  ;;  %v113_v58 = vld [vmem:[#allocation2 + $0x1e0] sm:$0xff] }
  0x4d   :  { %v307_v4 = vmax.f32 %v243_v48, 0.0  ;;  %v308_v5 = vmax.f32 %v244_v53, 0.0  ;;  %v247_v7 = vadd.f32 %v1885_v9, %v176_v61  ;;  %v277_v11 = vmax.f32 %v213_v54, 0.0 }
  0x4e   :  { %v248_v8 = vadd.f32 %v1885_v9, %v177_v62  ;;  %v309_v13 = vmax.f32 %v245_v56, 0.0  ;;  %v310_v14 = vmax.f32 %v246_v57, 0.0  ;;  %v346_v16 = vpack.c.bf16 %v306_v59, %v305_v52  ;;  %v114_v59 = vld [vmem:[#allocation2 + $0x1e8] sm:$0xff] }
  0x4f   :  { %v279_v17 = vmax.f32 %v215_v60, 0.0  ;;  %v280_v18 = vmax.f32 %v216_v1, 0.0  ;;  %v147_v19 = vmul.f32 %v1878_v6, %v76_v2  ;;  %v331_v22 = vpack.c.bf16 %v276_v0, %v275_v63  ;;  %v83_v0 = vld [vmem:[#allocation2 + $0xf0] sm:$0xff] }
  0x50   :  { %1644 = vmatmul.mubr.bf16.gmra.mrb[4].mxu0 %v1927_v36  ;;  %1676 = vmatmul.mubr.bf16.gmra.mrb[4].mxu1 %v1931_v41  ;;  %v75_v36 = vld [vmem:[#allocation2 + $0xb0] sm:$0xff]  ;;  %v214_v41 = vadd.f32 %v1885_v9, %v143_v39  ;;  %v178_v24 = vmul.f32 %v1878_v6, %v107_v10  ;;  %v347_v27 = vpack.c.bf16 %v308_v5, %v307_v4  ;;  %v311_v28 = vmax.f32 %v247_v7, 0.0  ;;  %v84_v5 = vld [vmem:[#allocation2 + $0xf8] sm:$0xff] }
  0x51   :  { %1647 = vmatprep.mubr.bf16.mxu0 %v327_v25  ;;  %1679 = vmatprep.mubr.bf16.mxu1 %v343_v26  ;;  %v146_v3 = vmul.f32 %v1878_v6, %v75_v36  ;;  %v109_v25 = vld [vmem:[#allocation2 + $0x1c0] sm:$0xff]  ;;  %v79_v26 = vld [vmem:[#allocation2 + $0xd0] sm:$0xff]  ;;  %v312_v29 = vmax.f32 %v248_v8, 0.0  ;;  %v179_v31 = vmul.f32 %v1878_v6, %v108_v15  ;;  %v149_v39 = vmul.f32 %v1878_v6, %v78_v21 }
  0x52   :  { %v278_v12 = vmax.f32 %v214_v41, 0.0  ;;  %v1997_v43 = vpack.c.bf16 %v280_v18, %v279_v17  ;;  %v150_v44 = vmul.f32 %v1878_v6, %v79_v26  ;;  %v2006_v47 = vadd.f32 %v1885_v9, %v178_v24 }
  0x53   :  { %v1987_v23 = vadd.f32 %v1885_v9, %v146_v3  ;;  %v181_v48 = vmul.f32 %v1878_v6, %v110_v32  ;;  %v151_v49 = vmul.f32 %v1878_v6, %v80_v33  ;;  %v349_v51 = vpack.c.bf16 %v312_v29, %v311_v28 }
  0x54   :  { %v1991_v34 = vpack.c.bf16 %v278_v12, %v277_v11  ;;  %v2011_v52 = vadd.f32 %v1885_v9, %v179_v31  ;;  %v221_v53 = vadd.f32 %v1885_v9, %v150_v44  ;;  %v182_v54 = vmul.f32 %v1878_v6, %v111_v40  ;;  %v115_v12 = vld [vmem:[#allocation2 + $0x1f0] sm:$0xff] }
  0x55   :  { %v281_v46 = vmax.f32 %v1987_v23, 0.0  ;;  %v2019_v41 = vadd.f32 %v1885_v9, %v149_v39  ;;  %v222_v56 = vadd.f32 %v1885_v9, %v151_v49  ;;  %v183_v57 = vmul.f32 %v1878_v6, %v112_v45 }
  0x56   :  { %v285_v61 = vmax.f32 %v221_v53, 0.0  ;;  %v253_v62 = vadd.f32 %v1885_v9, %v182_v54  ;;  %v152_v63 = vmul.f32 %v1878_v6, %v81_v50  ;;  %v252_v1 = vadd.f32 %v1885_v9, %v181_v48 }
  0x57   :  { %v286_v2 = vmax.f32 %v222_v56, 0.0  ;;  %v254_v3 = vadd.f32 %v1885_v9, %v183_v57  ;;  %v153_v4 = vmul.f32 %v1878_v6, %v82_v55  ;;  %v184_v10 = vmul.f32 %v1878_v6, %v113_v58 }
  0x58   :  { %1648 = vmatmul.mubr.bf16.gmra.mrb[8].mxu0 %v328_v30  ;;  %1680 = vmatmul.mubr.bf16.gmra.mrb[8].mxu1 %v344_v35  ;;  %v1993_v30 = vpack.c.bf16 %v310_v14, %v309_v13  ;;  %v148_v35 = vmul.f32 %v1878_v6, %v77_v20  ;;  %v317_v7 = vmax.f32 %v253_v62, 0.0  ;;  %v223_v8 = vadd.f32 %v1885_v9, %v152_v63 }
  0x59   :  { %1651 = vmatprep.mubr.bf16.mxu0 %v329_v37  ;;  %1683 = vmatprep.mubr.bf16.mxu1 %v345_v38  ;;  %v2000_v37 = vadd.f32 %v1885_v9, %v147_v19  ;;  %v180_v38 = vmul.f32 %v1878_v6, %v109_v25  ;;  %v185_v11 = vmul.f32 %v1878_v6, %v114_v59  ;;  %v318_v13 = vmax.f32 %v254_v3, 0.0 }
  0x5a   :  { %v2016_v36 = vadd.f32 %v1885_v9, %v148_v35  ;;  %v224_v14 = vadd.f32 %v1885_v9, %v153_v4  ;;  %v154_v15 = vmul.f32 %v1878_v6, %v83_v0  ;;  %v287_v17 = vmax.f32 %v223_v8, 0.0 }
  0x5b   :  { %v251_v60 = vadd.f32 %v1885_v9, %v180_v38  ;;  %v255_v18 = vadd.f32 %v1885_v9, %v184_v10  ;;  %v256_v19 = vadd.f32 %v1885_v9, %v185_v11  ;;  %v155_v20 = vmul.f32 %v1878_v6, %v84_v5 }
  0x5c   :  { %v352_v21 = vpack.c.bf16 %v318_v13, %v317_v7  ;;  %v225_v24 = vadd.f32 %v1885_v9, %v154_v15  ;;  %v186_v25 = vmul.f32 %v1878_v6, %v115_v12  ;;  %v282_v31 = vmax.f32 %v2000_v37, 0.0 }
  0x5d   :  { %v319_v26 = vmax.f32 %v255_v18, 0.0  ;;  %v226_v28 = vadd.f32 %v1885_v9, %v155_v20  ;;  %v313_v39 = vmax.f32 %v2006_v47, 0.0  ;;  %v314_v45 = vmax.f32 %v2011_v52, 0.0 }
  0x5e   :  { %v289_v33 = vmax.f32 %v225_v24, 0.0  ;;  %v257_v35 = vadd.f32 %v1885_v9, %v186_v25  ;;  %v284_v37 = vmax.f32 %v2019_v41, 0.0  ;;  %v315_v49 = vmax.f32 %v251_v60, 0.0 }
  0x5f   :  { %v290_v38 = vmax.f32 %v226_v28, 0.0  ;;  %v316_v47 = vmax.f32 %v252_v1, 0.0 }
  0x60   :  { %1652 = vmatmul.mubr.bf16.gmra.mrb[12].mxu0 %v1961_v42  ;;  %1684 = vmatmul.mubr.bf16.gmra.mrb[12].mxu1 %v346_v16  ;;  %v336_v42 = vpack.c.bf16 %v286_v2, %v285_v61  ;;  %v116_v16 = vld [vmem:[#allocation2 + $0x1f8] sm:$0xff]  ;;  %v321_v48 = vmax.f32 %v257_v35, 0.0 }
  0x61   :  { %1655 = vmatprep.mubr.bf16.mxu0 %v331_v22  ;;  %1687 = vmatprep.mubr.bf16.mxu1 %v347_v27  ;;  %v288_v22 = vmax.f32 %v224_v14, 0.0  ;;  %v320_v27 = vmax.f32 %v256_v19, 0.0  ;;  %v187_v29 = vmul.f32 %v1878_v6, %v116_v16  ;;  %v283_v6 = vmax.f32 %v2016_v36, 0.0 }
  0x62   :  { %v338_v50 = vpack.c.bf16 %v290_v38, %v289_v33  ;;  %v351_v55 = vpack.c.bf16 %v316_v47, %v315_v49 }
  0x63   :  { %v337_v32 = vpack.c.bf16 %v288_v22, %v287_v17  ;;  %v353_v40 = vpack.c.bf16 %v320_v27, %v319_v26  ;;  %v258_v44 = vadd.f32 %v1885_v9, %v187_v29  ;;  %v334_v9 = vpack.c.bf16 %v282_v31, %v281_v46  ;;  %v2062_v46 = vld [vmem:[%s2212_s5] ss:$0 sm:$0xff] }
  0x65   :  { %v322_v53 = vmax.f32 %v258_v44, 0.0 }
  0x67   :  { %v354_v54 = vpack.c.bf16 %v322_v53, %v321_v48 }
  0x68   :  { %1656 = vmatmul.mubr.bf16.gmra.mrb[16].mxu0 %v1991_v34  ;;  %1688 = vmatmul.mubr.bf16.gmra.mrb[16].mxu1 %v1993_v30  ;;  %v350_v34 = vpack.c.bf16 %v314_v45, %v313_v39  ;;  %v335_v30 = vpack.c.bf16 %v284_v37, %v283_v6 }
  0x69   :  { %1659 = vmatprep.mubr.bf16.mxu0 %v1997_v43  ;;  %1691 = vmatprep.mubr.bf16.mxu1 %v349_v51  ;;  %v2057_v43 = vld [vmem:[%s2211_s4] ss:$0 sm:$0xff]  ;;  %s1812_s4 = smov [#allocation7]  }
  0x6a   :  { %s1239_s5 = sshll.u32 %s1812_s4, 4  ;;  %s1240_s5 = int_to_ptr.vmem [resolvable:$true] %s1239_s5 }
  0x6b   :  { %s1778_s29 = scalar_lea.vmem %s1240_s5, 4096  ;;  %p1783_p3 = scmp.lt.s32.totalorder %s1240_s5, %s1240_s5 }
  0x6c   :  { %p1779_p2 = scmp.ne.s32.totalorder %s1240_s5, %s1778_s29  ;;  %p1784_p4 = scmp.lt.s32.totalorder %s1778_s29, %s1778_s29 }
  0x6e   :  { %p1785_p5 = por %p1784_p4, %p1783_p3 }
  0x70   :  { %1660 = vmatmul.mubr.bf16.gmra.mrb[20].mxu0 %v334_v9  ;;  %1692 = vmatmul.mubr.bf16.gmra.mrb[20].mxu1 %v350_v34  ;;  %p1786_p6 = pnand %p1785_p5, %p1779_p2 }
  0x71   :  { %1663 = vmatprep.mubr.bf16.mxu0 %v335_v30  ;;  %1695 = vmatprep.mubr.bf16.mxu1 %v351_v55 }
  0x78   :  { %1664 = vmatmul.mubr.bf16.gmra.mrb[24].mxu0 %v336_v42  ;;  %1696 = vmatmul.mubr.bf16.gmra.mrb[24].mxu1 %v352_v21 }
  0x79   :  { %1667 = vmatprep.mubr.bf16.mxu0 %v337_v32  ;;  %1699 = vmatprep.mubr.bf16.mxu1 %v353_v40 }
  0x80   :  { %1668 = vmatmul.mubr.bf16.gmra.mrb[28].mxu0 %v338_v50  ;;  %1700 = vmatmul.mubr.bf16.gmra.mrb[28].mxu1 %v354_v54 }
 0x11b   :  { %v1641_v23 = vpop.f32.mrb[0].mxu0  ;;  %v1673_v51 = vpop.f32.mrb[0].mxu1 }
 0x11c   :  { %v717_v52 = vmul.f32 %v1641_v23, %v2057_v43  ;;  %v749_v36 = vmul.f32 %v1673_v51, %v2057_v43  ;;  %v453_v41 = vpop.f32.mrb[1].mxu0  ;;  %v581_v56 = vpop.f32.mrb[1].mxu1 }
 0x11d   :  { %v715_v57 = vmul.f32 %v2057_v43, %v453_v41  ;;  %v747_v58 = vmul.f32 %v2057_v43, %v581_v56  ;;  %v1642_v59 = vpop.f32.mrb[2].mxu0  ;;  %v1674_v60 = vpop.f32.mrb[2].mxu1 }
 0x11e   :  { %v788_v61 = vadd.f32 %v2062_v46, %v717_v52  ;;  %v820_v62 = vadd.f32 %v2062_v46, %v749_v36  ;;  %v718_v63 = vmul.f32 %v1642_v59, %v2057_v43  ;;  %v750_v0 = vmul.f32 %v1674_v60, %v2057_v43  ;;  %v456_v1 = vpop.f32.mrb[3].mxu0  ;;  %v584_v2 = vpop.f32.mrb[3].mxu1 }
 0x11f   :  { %v786_v3 = vadd.f32 %v2062_v46, %v715_v57  ;;  %v818_v4 = vadd.f32 %v2062_v46, %v747_v58  ;;  %v716_v5 = vmul.f32 %v2057_v43, %v456_v1  ;;  %v748_v7 = vmul.f32 %v2057_v43, %v584_v2 }
 0x120   :  { %v789_v8 = vadd.f32 %v2062_v46, %v718_v63  ;;  %v821_v10 = vadd.f32 %v2062_v46, %v750_v0  ;;  %v852_v42 = vmax.f32 %v788_v61, 0.0  ;;  %v884_v13 = vmax.f32 %v820_v62, 0.0 }
 0x121   :  { %v787_v11 = vadd.f32 %v2062_v46, %v716_v5  ;;  %v819_v12 = vadd.f32 %v2062_v46, %v748_v7  ;;  %v850_v16 = vmax.f32 %v786_v3, 0.0  ;;  %v882_v17 = vmax.f32 %v818_v4, 0.0 }
 0x122   :  { %v853_v14 = vmax.f32 %v789_v8, 0.0  ;;  %v885_v15 = vmax.f32 %v821_v10, 0.0 }
 0x123   :  { %v851_v18 = vmax.f32 %v787_v11, 0.0  ;;  %v883_v19 = vmax.f32 %v819_v12, 0.0  ;;  %v1645_v20 = vpop.f32.mrb[4].mxu0  ;;  %v1677_v21 = vpop.f32.mrb[4].mxu1 }
 0x124   :  { %v1400_v22 = vpack.c.bf16 %v853_v14, %v852_v42  ;;  %v1480_v24 = vpack.c.bf16 %v885_v15, %v884_v13  ;;  %v721_v25 = vmul.f32 %v1645_v20, %v2057_v43  ;;  %v753_v26 = vmul.f32 %v1677_v21, %v2057_v43  ;;  %v469_v27 = vpop.f32.mrb[5].mxu0  ;;  %v597_v28 = vpop.f32.mrb[5].mxu1 }
 0x125   :  { %v1395_v29 = vpack.c.bf16 %v851_v18, %v850_v16  ;;  %v1475_v31 = vpack.c.bf16 %v883_v19, %v882_v17  ;;  %v719_v32 = vmul.f32 %v2057_v43, %v469_v27  ;;  %v751_v33 = vmul.f32 %v2057_v43, %v597_v28  ;;  %v1646_v35 = vpop.f32.mrb[6].mxu0  ;;  %v1678_v39 = vpop.f32.mrb[6].mxu1 }
 0x126   :  { %1552 = vst [vmem:[#allocation7 + $0x8] sm:$0xff] %v1400_v22   ;;  %1568 = vst [vmem:[#allocation7 + $0x88] sm:$0xff] %v1480_v24   ;;  %v792_v40 = vadd.f32 %v2062_v46, %v721_v25  ;;  %v824_v38 = vadd.f32 %v2062_v46, %v753_v26  ;;  %v722_v44 = vmul.f32 %v1646_v35, %v2057_v43  ;;  %v472_v6 = vpop.f32.mrb[7].mxu0  ;;  %v600_v37 = vpop.f32.mrb[7].mxu1 }
 0x127   :  { %v754_v45 = vmul.f32 %v1678_v39, %v2057_v43  ;;  %1396 = vst [vmem:[#allocation7] sm:$0xff] %v1395_v29   ;;  %1567 = vst [vmem:[#allocation7 + $0x80] sm:$0xff] %v1475_v31   ;;  %v790_v48 = vadd.f32 %v2062_v46, %v719_v32  ;;  %v822_v49 = vadd.f32 %v2062_v46, %v751_v33 }
 0x128   :  { %v720_v47 = vmul.f32 %v2057_v43, %v472_v6  ;;  %v752_v50 = vmul.f32 %v2057_v43, %v600_v37  ;;  %v793_v53 = vadd.f32 %v2062_v46, %v722_v44  ;;  %v856_v30 = vmax.f32 %v792_v40, 0.0 }
 0x129   :  { %v825_v54 = vadd.f32 %v2062_v46, %v754_v45  ;;  %v888_v55 = vmax.f32 %v824_v38, 0.0  ;;  %v854_v52 = vmax.f32 %v790_v48, 0.0  ;;  %v886_v36 = vmax.f32 %v822_v49, 0.0 }
 0x12a   :  { %v791_v9 = vadd.f32 %v2062_v46, %v720_v47  ;;  %v823_v34 = vadd.f32 %v2062_v46, %v752_v50  ;;  %v857_v23 = vmax.f32 %v793_v53, 0.0 }
 0x12b   :  { %v889_v51 = vmax.f32 %v825_v54, 0.0  ;;  %v1649_v57 = vpop.f32.mrb[8].mxu0  ;;  %v1681_v58 = vpop.f32.mrb[8].mxu1 }
 0x12c   :  { %v855_v41 = vmax.f32 %v791_v9, 0.0  ;;  %v887_v56 = vmax.f32 %v823_v34, 0.0  ;;  %v1410_v59 = vpack.c.bf16 %v857_v23, %v856_v30  ;;  %v725_v61 = vmul.f32 %v1649_v57, %v2057_v43  ;;  %v485_v63 = vpop.f32.mrb[9].mxu0  ;;  %v613_v0 = vpop.f32.mrb[9].mxu1 }
 0x12d   :  { %v1490_v60 = vpack.c.bf16 %v889_v51, %v888_v55  ;;  %v757_v62 = vmul.f32 %v1681_v58, %v2057_v43  ;;  %v723_v3 = vmul.f32 %v2057_v43, %v485_v63  ;;  %v755_v4 = vmul.f32 %v2057_v43, %v613_v0  ;;  %v1650_v5 = vpop.f32.mrb[10].mxu0  ;;  %v1682_v7 = vpop.f32.mrb[10].mxu1 }
 0x12e   :  { %v1405_v1 = vpack.c.bf16 %v855_v41, %v854_v52  ;;  %v1485_v2 = vpack.c.bf16 %v887_v56, %v886_v36  ;;  %1554 = vst [vmem:[#allocation7 + $0x18] sm:$0xff] %v1410_v59   ;;  %v796_v8 = vadd.f32 %v2062_v46, %v725_v61  ;;  %v726_v11 = vmul.f32 %v1650_v5, %v2057_v43  ;;  %v488_v42 = vpop.f32.mrb[11].mxu0  ;;  %v616_v13 = vpop.f32.mrb[11].mxu1 }
 0x12f   :  { %1570 = vst [vmem:[#allocation7 + $0x98] sm:$0xff] %v1490_v60   ;;  %v828_v10 = vadd.f32 %v2062_v46, %v757_v62  ;;  %v758_v12 = vmul.f32 %v1682_v7, %v2057_v43  ;;  %v794_v14 = vadd.f32 %v2062_v46, %v723_v3  ;;  %v826_v15 = vadd.f32 %v2062_v46, %v755_v4 }
 0x130   :  { %1553 = vst [vmem:[#allocation7 + $0x10] sm:$0xff] %v1405_v1   ;;  %1569 = vst [vmem:[#allocation7 + $0x90] sm:$0xff] %v1485_v2   ;;  %v724_v16 = vmul.f32 %v2057_v43, %v488_v42  ;;  %v756_v17 = vmul.f32 %v2057_v43, %v616_v13  ;;  %v797_v18 = vadd.f32 %v2062_v46, %v726_v11  ;;  %v860_v22 = vmax.f32 %v796_v8, 0.0 }
 0x131   :  { %v829_v19 = vadd.f32 %v2062_v46, %v758_v12  ;;  %v892_v24 = vmax.f32 %v828_v10, 0.0  ;;  %v858_v27 = vmax.f32 %v794_v14, 0.0  ;;  %v890_v28 = vmax.f32 %v826_v15, 0.0 }
 0x132   :  { %v795_v20 = vadd.f32 %v2062_v46, %v724_v16  ;;  %v827_v21 = vadd.f32 %v2062_v46, %v756_v17  ;;  %v861_v25 = vmax.f32 %v797_v18, 0.0 }
 0x133   :  { %v893_v26 = vmax.f32 %v829_v19, 0.0  ;;  %v1653_v32 = vpop.f32.mrb[12].mxu0  ;;  %v1685_v33 = vpop.f32.mrb[12].mxu1 }
 0x134   :  { %v859_v29 = vmax.f32 %v795_v20, 0.0  ;;  %v891_v31 = vmax.f32 %v827_v21, 0.0  ;;  %v1420_v35 = vpack.c.bf16 %v861_v25, %v860_v22  ;;  %v729_v40 = vmul.f32 %v1653_v32, %v2057_v43  ;;  %v501_v44 = vpop.f32.mrb[13].mxu0  ;;  %v629_v45 = vpop.f32.mrb[13].mxu1 }
 0x135   :  { %v1500_v39 = vpack.c.bf16 %v893_v26, %v892_v24  ;;  %v761_v38 = vmul.f32 %v1685_v33, %v2057_v43  ;;  %v727_v48 = vmul.f32 %v2057_v43, %v501_v44  ;;  %v759_v49 = vmul.f32 %v2057_v43, %v629_v45  ;;  %v1654_v47 = vpop.f32.mrb[14].mxu0  ;;  %v1686_v50 = vpop.f32.mrb[14].mxu1 }
 0x136   :  { %v1415_v6 = vpack.c.bf16 %v859_v29, %v858_v27  ;;  %v1495_v37 = vpack.c.bf16 %v891_v31, %v890_v28  ;;  %1556 = vst [vmem:[#allocation7 + $0x28] sm:$0xff] %v1420_v35   ;;  %v800_v53 = vadd.f32 %v2062_v46, %v729_v40  ;;  %v730_v9 = vmul.f32 %v1654_v47, %v2057_v43  ;;  %v504_v30 = vpop.f32.mrb[15].mxu0  ;;  %v632_v55 = vpop.f32.mrb[15].mxu1 }
 0x137   :  { %1572 = vst [vmem:[#allocation7 + $0xa8] sm:$0xff] %v1500_v39   ;;  %v832_v54 = vadd.f32 %v2062_v46, %v761_v38  ;;  %v762_v34 = vmul.f32 %v1686_v50, %v2057_v43  ;;  %v798_v23 = vadd.f32 %v2062_v46, %v727_v48  ;;  %v830_v51 = vadd.f32 %v2062_v46, %v759_v49 }
 0x138   :  { %1555 = vst [vmem:[#allocation7 + $0x20] sm:$0xff] %v1415_v6   ;;  %1571 = vst [vmem:[#allocation7 + $0xa0] sm:$0xff] %v1495_v37   ;;  %v728_v52 = vmul.f32 %v2057_v43, %v504_v30  ;;  %v760_v36 = vmul.f32 %v2057_v43, %v632_v55  ;;  %v801_v41 = vadd.f32 %v2062_v46, %v730_v9  ;;  %v864_v59 = vmax.f32 %v800_v53, 0.0 }
 0x139   :  { %v833_v56 = vadd.f32 %v2062_v46, %v762_v34  ;;  %v896_v60 = vmax.f32 %v832_v54, 0.0  ;;  %v862_v63 = vmax.f32 %v798_v23, 0.0  ;;  %v894_v0 = vmax.f32 %v830_v51, 0.0 }
 0x13a   :  { %v799_v57 = vadd.f32 %v2062_v46, %v728_v52  ;;  %v831_v58 = vadd.f32 %v2062_v46, %v760_v36  ;;  %v865_v61 = vmax.f32 %v801_v41, 0.0 }
 0x13b   :  { %v897_v62 = vmax.f32 %v833_v56, 0.0  ;;  %v1657_v3 = vpop.f32.mrb[16].mxu0  ;;  %v1689_v4 = vpop.f32.mrb[16].mxu1 }
 0x13c   :  { %v863_v1 = vmax.f32 %v799_v57, 0.0  ;;  %v895_v2 = vmax.f32 %v831_v58, 0.0  ;;  %v1430_v5 = vpack.c.bf16 %v865_v61, %v864_v59  ;;  %v733_v8 = vmul.f32 %v1657_v3, %v2057_v43  ;;  %v517_v11 = vpop.f32.mrb[17].mxu0  ;;  %v645_v12 = vpop.f32.mrb[17].mxu1 }
 0x13d   :  { %v1510_v7 = vpack.c.bf16 %v897_v62, %v896_v60  ;;  %v765_v10 = vmul.f32 %v1689_v4, %v2057_v43  ;;  %v731_v14 = vmul.f32 %v2057_v43, %v517_v11  ;;  %v763_v15 = vmul.f32 %v2057_v43, %v645_v12  ;;  %v1658_v16 = vpop.f32.mrb[18].mxu0  ;;  %v1690_v17 = vpop.f32.mrb[18].mxu1 }
 0x13e   :  { %v1425_v42 = vpack.c.bf16 %v863_v1, %v862_v63  ;;  %v1505_v13 = vpack.c.bf16 %v895_v2, %v894_v0  ;;  %1558 = vst [vmem:[#allocation7 + $0x38] sm:$0xff] %v1430_v5   ;;  %v804_v18 = vadd.f32 %v2062_v46, %v733_v8  ;;  %v734_v20 = vmul.f32 %v1658_v16, %v2057_v43  ;;  %v520_v22 = vpop.f32.mrb[19].mxu0  ;;  %v648_v24 = vpop.f32.mrb[19].mxu1 }
 0x13f   :  { %1574 = vst [vmem:[#allocation7 + $0xb8] sm:$0xff] %v1510_v7   ;;  %v836_v19 = vadd.f32 %v2062_v46, %v765_v10  ;;  %v766_v21 = vmul.f32 %v1690_v17, %v2057_v43  ;;  %v802_v25 = vadd.f32 %v2062_v46, %v731_v14  ;;  %v834_v26 = vadd.f32 %v2062_v46, %v763_v15 }
 0x140   :  { %1557 = vst [vmem:[#allocation7 + $0x30] sm:$0xff] %v1425_v42   ;;  %1573 = vst [vmem:[#allocation7 + $0xb0] sm:$0xff] %v1505_v13   ;;  %v732_v27 = vmul.f32 %v2057_v43, %v520_v22  ;;  %v764_v28 = vmul.f32 %v2057_v43, %v648_v24  ;;  %v805_v29 = vadd.f32 %v2062_v46, %v734_v20  ;;  %v868_v35 = vmax.f32 %v804_v18, 0.0 }
 0x141   :  { %v837_v31 = vadd.f32 %v2062_v46, %v766_v21  ;;  %v900_v39 = vmax.f32 %v836_v19, 0.0  ;;  %v866_v44 = vmax.f32 %v802_v25, 0.0  ;;  %v898_v45 = vmax.f32 %v834_v26, 0.0 }
 0x142   :  { %v803_v32 = vadd.f32 %v2062_v46, %v732_v27  ;;  %v835_v33 = vadd.f32 %v2062_v46, %v764_v28  ;;  %v869_v40 = vmax.f32 %v805_v29, 0.0 }
 0x143   :  { %v901_v38 = vmax.f32 %v837_v31, 0.0  ;;  %v1661_v48 = vpop.f32.mrb[20].mxu0  ;;  %v1693_v49 = vpop.f32.mrb[20].mxu1 }
 0x144   :  { %v867_v6 = vmax.f32 %v803_v32, 0.0  ;;  %v899_v37 = vmax.f32 %v835_v33, 0.0  ;;  %v1440_v47 = vpack.c.bf16 %v869_v40, %v868_v35  ;;  %v737_v53 = vmul.f32 %v1661_v48, %v2057_v43  ;;  %v533_v9 = vpop.f32.mrb[21].mxu0  ;;  %v661_v34 = vpop.f32.mrb[21].mxu1 }
 0x145   :  { %v1520_v50 = vpack.c.bf16 %v901_v38, %v900_v39  ;;  %v769_v54 = vmul.f32 %v1693_v49, %v2057_v43  ;;  %v735_v23 = vmul.f32 %v2057_v43, %v533_v9  ;;  %v767_v51 = vmul.f32 %v2057_v43, %v661_v34  ;;  %v1662_v52 = vpop.f32.mrb[22].mxu0  ;;  %v1694_v36 = vpop.f32.mrb[22].mxu1 }
 0x146   :  { %v1435_v30 = vpack.c.bf16 %v867_v6, %v866_v44  ;;  %v1515_v55 = vpack.c.bf16 %v899_v37, %v898_v45  ;;  %1560 = vst [vmem:[#allocation7 + $0x48] sm:$0xff] %v1440_v47   ;;  %v808_v41 = vadd.f32 %v2062_v46, %v737_v53  ;;  %v738_v57 = vmul.f32 %v1662_v52, %v2057_v43  ;;  %v536_v59 = vpop.f32.mrb[23].mxu0  ;;  %v664_v60 = vpop.f32.mrb[23].mxu1 }
 0x147   :  { %1576 = vst [vmem:[#allocation7 + $0xc8] sm:$0xff] %v1520_v50   ;;  %v840_v56 = vadd.f32 %v2062_v46, %v769_v54  ;;  %v770_v58 = vmul.f32 %v1694_v36, %v2057_v43  ;;  %v806_v61 = vadd.f32 %v2062_v46, %v735_v23  ;;  %v838_v62 = vadd.f32 %v2062_v46, %v767_v51 }
 0x148   :  { %1559 = vst [vmem:[#allocation7 + $0x40] sm:$0xff] %v1435_v30   ;;  %1575 = vst [vmem:[#allocation7 + $0xc0] sm:$0xff] %v1515_v55   ;;  %v736_v63 = vmul.f32 %v2057_v43, %v536_v59  ;;  %v768_v0 = vmul.f32 %v2057_v43, %v664_v60  ;;  %v809_v1 = vadd.f32 %v2062_v46, %v738_v57  ;;  %v872_v5 = vmax.f32 %v808_v41, 0.0 }
 0x149   :  { %v841_v2 = vadd.f32 %v2062_v46, %v770_v58  ;;  %v904_v7 = vmax.f32 %v840_v56, 0.0  ;;  %v870_v11 = vmax.f32 %v806_v61, 0.0  ;;  %v902_v12 = vmax.f32 %v838_v62, 0.0 }
 0x14a   :  { %v807_v3 = vadd.f32 %v2062_v46, %v736_v63  ;;  %v839_v4 = vadd.f32 %v2062_v46, %v768_v0  ;;  %v873_v8 = vmax.f32 %v809_v1, 0.0 }
 0x14b   :  { %v905_v10 = vmax.f32 %v841_v2, 0.0  ;;  %v1665_v14 = vpop.f32.mrb[24].mxu0  ;;  %v1697_v15 = vpop.f32.mrb[24].mxu1 }
 0x14c   :  { %v871_v42 = vmax.f32 %v807_v3, 0.0  ;;  %v903_v13 = vmax.f32 %v839_v4, 0.0  ;;  %v1450_v16 = vpack.c.bf16 %v873_v8, %v872_v5  ;;  %v741_v18 = vmul.f32 %v1665_v14, %v2057_v43  ;;  %v549_v20 = vpop.f32.mrb[25].mxu0  ;;  %v677_v21 = vpop.f32.mrb[25].mxu1 }
 0x14d   :  { %v1530_v17 = vpack.c.bf16 %v905_v10, %v904_v7  ;;  %v773_v19 = vmul.f32 %v1697_v15, %v2057_v43  ;;  %v739_v25 = vmul.f32 %v2057_v43, %v549_v20  ;;  %v771_v26 = vmul.f32 %v2057_v43, %v677_v21  ;;  %v1666_v27 = vpop.f32.mrb[26].mxu0  ;;  %v1698_v28 = vpop.f32.mrb[26].mxu1 }
 0x14e   :  { %v1445_v22 = vpack.c.bf16 %v871_v42, %v870_v11  ;;  %v1525_v24 = vpack.c.bf16 %v903_v13, %v902_v12  ;;  %1562 = vst [vmem:[#allocation7 + $0x58] sm:$0xff] %v1450_v16   ;;  %v812_v29 = vadd.f32 %v2062_v46, %v741_v18  ;;  %v742_v32 = vmul.f32 %v1666_v27, %v2057_v43  ;;  %v552_v35 = vpop.f32.mrb[27].mxu0  ;;  %v680_v39 = vpop.f32.mrb[27].mxu1 }
 0x14f   :  { %1578 = vst [vmem:[#allocation7 + $0xd8] sm:$0xff] %v1530_v17   ;;  %v844_v31 = vadd.f32 %v2062_v46, %v773_v19  ;;  %v774_v33 = vmul.f32 %v1698_v28, %v2057_v43  ;;  %v810_v40 = vadd.f32 %v2062_v46, %v739_v25  ;;  %v842_v38 = vadd.f32 %v2062_v46, %v771_v26 }
 0x150   :  { %1561 = vst [vmem:[#allocation7 + $0x50] sm:$0xff] %v1445_v22   ;;  %1577 = vst [vmem:[#allocation7 + $0xd0] sm:$0xff] %v1525_v24   ;;  %v740_v44 = vmul.f32 %v2057_v43, %v552_v35  ;;  %v772_v45 = vmul.f32 %v2057_v43, %v680_v39  ;;  %v813_v6 = vadd.f32 %v2062_v46, %v742_v32  ;;  %v876_v47 = vmax.f32 %v812_v29, 0.0 }
 0x151   :  { %v845_v37 = vadd.f32 %v2062_v46, %v774_v33  ;;  %v908_v50 = vmax.f32 %v844_v31, 0.0  ;;  %v874_v9 = vmax.f32 %v810_v40, 0.0  ;;  %v906_v34 = vmax.f32 %v842_v38, 0.0 }
 0x152   :  { %v811_v48 = vadd.f32 %v2062_v46, %v740_v44  ;;  %v843_v49 = vadd.f32 %v2062_v46, %v772_v45  ;;  %v877_v53 = vmax.f32 %v813_v6, 0.0 }
 0x153   :  { %v909_v54 = vmax.f32 %v845_v37, 0.0  ;;  %v1669_v23 = vpop.f32.mrb[28].mxu0  ;;  %v1701_v51 = vpop.f32.mrb[28].mxu1 }
 0x154   :  { %v875_v30 = vmax.f32 %v811_v48, 0.0  ;;  %v907_v55 = vmax.f32 %v843_v49, 0.0  ;;  %v1460_v52 = vpack.c.bf16 %v877_v53, %v876_v47  ;;  %v745_v41 = vmul.f32 %v1669_v23, %v2057_v43  ;;  %v565_v57 = vpop.f32.mrb[29].mxu0  ;;  %v693_v58 = vpop.f32.mrb[29].mxu1 }
 0x155   :  { %v1540_v36 = vpack.c.bf16 %v909_v54, %v908_v50  ;;  %v777_v56 = vmul.f32 %v1701_v51, %v2057_v43  ;;  %v743_v61 = vmul.f32 %v2057_v43, %v565_v57  ;;  %v775_v62 = vmul.f32 %v2057_v43, %v693_v58  ;;  %v1670_v63 = vpop.f32.mrb[30].mxu0  ;;  %v1702_v0 = vpop.f32.mrb[30].mxu1 }
 0x156   :  { %v1455_v59 = vpack.c.bf16 %v875_v30, %v874_v9  ;;  %v1535_v60 = vpack.c.bf16 %v907_v55, %v906_v34  ;;  %1564 = vst [vmem:[#allocation7 + $0x68] sm:$0xff] %v1460_v52   ;;  %v816_v1 = vadd.f32 %v2062_v46, %v745_v41  ;;  %v746_v3 = vmul.f32 %v1670_v63, %v2057_v43  ;;  %v568_v5 = vpop.f32.mrb[31].mxu0  ;;  %v696_v7 = vpop.f32.mrb[31].mxu1 }
 0x157   :  { %1580 = vst [vmem:[#allocation7 + $0xe8] sm:$0xff] %v1540_v36   ;;  %v848_v2 = vadd.f32 %v2062_v46, %v777_v56  ;;  %v778_v4 = vmul.f32 %v1702_v0, %v2057_v43  ;;  %v814_v8 = vadd.f32 %v2062_v46, %v743_v61  ;;  %v846_v10 = vadd.f32 %v2062_v46, %v775_v62 }
 0x158   :  { %1563 = vst [vmem:[#allocation7 + $0x60] sm:$0xff] %v1455_v59   ;;  %1579 = vst [vmem:[#allocation7 + $0xe0] sm:$0xff] %v1535_v60   ;;  %v744_v11 = vmul.f32 %v2057_v43, %v568_v5  ;;  %v776_v12 = vmul.f32 %v2057_v43, %v696_v7  ;;  %v817_v42 = vadd.f32 %v2062_v46, %v746_v3  ;;  %v880_v16 = vmax.f32 %v816_v1, 0.0 }
 0x159   :  { %v849_v13 = vadd.f32 %v2062_v46, %v778_v4  ;;  %v912_v17 = vmax.f32 %v848_v2, 0.0  ;;  %v878_v20 = vmax.f32 %v814_v8, 0.0  ;;  %v910_v21 = vmax.f32 %v846_v10, 0.0 }
 0x15a   :  { %v815_v14 = vadd.f32 %v2062_v46, %v744_v11  ;;  %v847_v15 = vadd.f32 %v2062_v46, %v776_v12  ;;  %v881_v18 = vmax.f32 %v817_v42, 0.0 }
 0x15b   :  { %v913_v19 = vmax.f32 %v849_v13, 0.0 }
 0x15c   :  { %v879_v22 = vmax.f32 %v815_v14, 0.0  ;;  %v911_v24 = vmax.f32 %v847_v15, 0.0  ;;  %v1470_v25 = vpack.c.bf16 %v881_v18, %v880_v16 }
 0x15d   :  { %v1550_v43 = vpack.c.bf16 %v913_v19, %v912_v17 }
 0x15e   :  { %v1465_v26 = vpack.c.bf16 %v879_v22, %v878_v20  ;;  %v1545_v27 = vpack.c.bf16 %v911_v24, %v910_v21  ;;  %1566 = vst [vmem:[#allocation7 + $0x78] sm:$0xff] %v1470_v25  }
 0x15f   :  { %1582 = vst [vmem:[#allocation7 + $0xf8] sm:$0xff] %v1550_v43  }
 0x160   :  { %1565 = vst [vmem:[#allocation7 + $0x70] sm:$0xff] %v1465_v26   ;;  %1581 = vst [vmem:[#allocation7 + $0xf0] sm:$0xff] %v1545_v27  }
 0x161   :  { %1789 = shalt.err (!%p1786_p6)
}
 0x162   :  { %s1790_s8 = scalar_lea.hbm %s2213_s6, 4096 }
 0x163   :  { %p1791_p7 = scmp.ne.s32.totalorder %s2213_s6, %s1790_s8  ;;  %p1794_p8 = scmp.lt.u32.totalorder %s1790_s8, %s2213_s6 }
 0x165   :  { %p1796_p9 = pnand %p1794_p8, %p1791_p7 }
 0x167   :  { %1799 = shalt.err (!%p1796_p9)
}
 0x168   :  { %1245 = dma.vmem_to_hbm [thread:$0]  %s1240_s5, 4096, %s2213_s6, [#allocation4], %s1810_s0, %s1810_s0, %s1811_s21  }
 0x169   :  { %1804 = dma.done.wait [#allocation4], 4096  }
 0x16a   :  { %1805 = vsyncadd [#allocation4], 4294963200 }
 0x16b   :  { %1249 = vsyncpa [#allocation3], 1 }
 0x16c   :  { %1250 = vsyncpa [#allocation6], 1 }
 0x16d   :  { %1251 = vsyncpa [#allocation4], 1 }

</bundles_post_ra>
